<compile_context>
chip_gen: v7x
topology: tpu7x:2x2x1
jax: 0.10.0
libtpu: 0.0.40
codegen_flags: <defaults>
</compile_context>

<pallas_src>
import jax
import jax.numpy as jnp
from jax.experimental import pallas as pl
from jax.experimental.pallas import tpu as pltpu


def head_kernel(x_ref, wd_ref, bd_ref, o_ref):
    # x_ref : [TILE_N, H]  activation tile, natural layout (N on sublanes, H on lanes)
    # wd_ref: [1, H]       wd = w[:, 1] - w[:, 0]   (VMEM-resident across grid steps)
    # bd_ref: [1, 1] SMEM  bd = b[1] - b[0]
    # o_ref : [TILE_N, 2]  col 0 = p(class 0), col 1 = p(class 1)
    x = x_ref[...].astype(jnp.float32)               # in-kernel upcast (bf16-friendly)
    # VPU multiply (sublane-broadcast of wd) + per-row cross-lane reduce over H.
    d = jnp.sum(x * wd_ref[...], axis=1, keepdims=True) + bd_ref[0, 0]   # [TILE_N, 1]
    # sigmoid(d) == softmax over 2 classes; single EUP exp.
    p1 = 1.0 / (1.0 + jnp.exp(-d))
    # Assemble [TILE_N, 2] and store the whole block once.
    col = jax.lax.broadcasted_iota(jnp.int32, (x.shape[0], 2), 1)
    o_ref[...] = jnp.where(col == 0, 1.0 - p1, p1).astype(o_ref.dtype)


def _round_up(x, m):
    return ((x + m - 1) // m) * m


def backbone_mlp_head(act, w, b, max_tile_n=None):
    """act: [N, H] (f32 or bf16), w: [H, 2], b: [2] -> softmax probs [N, 2] f32."""
    n, h = act.shape

    # Fold the 2-class head into a single matvec + sigmoid (exactly equivalent to
    # softmax over 2 classes, up to f32 reassociation). Tiny params, negligible HBM.
    wd = (w[:, 1] - w[:, 0]).astype(jnp.float32).reshape(1, h)   # [1, H] -> VMEM resident
    bd = (b[1] - b[0]).astype(jnp.float32).reshape(1, 1)         # scalar -> SMEM

    # ---- tile selection over N (natural layout; no wrapper transpose / pad) ----
    try:
        info = pltpu.get_tpu_info()
        vmem_cap = int(getattr(info, "vmem_capacity_bytes", 64 * 2 ** 20))
    except Exception:
        vmem_cap = 64 * 2 ** 20            # conservative fallback: v7x per-TC VMEM
    budget = (3 * vmem_cap) // 8           # ~24 MiB on v7x, ~48 MiB on v5e/v6e

    if n <= 128:
        tile = n                           # single block; block dims == array dims
    else:
        # Conservative VMEM bytes/row: lane-padded (>=128 lanes) f32, double-buffered
        # input + in-kernel f32 temps + double-buffered (lane-padded) output.
        in_row = max(h, 128) * 4
        out_row = 128 * 4
        per_row = 4 * in_row + 3 * out_row
        tile = max(128, (budget // per_row) // 128 * 128)
        tile = min(tile, _round_up(n, 128))                       # no gross over-tiling
        tile = min(tile, max(128, _round_up((n + 1) // 2, 128)))  # >=2 blocks (v7x megacore)
        if max_tile_n is not None:
            tile = max(128, min(tile, (max_tile_n // 128) * 128))

    grid = (pl.cdiv(n, tile),)             # ragged tail -> partial edge block (no pad)

    return pl.pallas_call(
        head_kernel,
        out_shape=jax.ShapeDtypeStruct((n, 2), jnp.float32),
        grid_spec=pltpu.PrefetchScalarGridSpec(
            num_scalar_prefetch=0,
            grid=grid,
            in_specs=[
                pl.BlockSpec((tile, h), lambda i: (i, 0)),          # act tile (only HBM pass)
                pl.BlockSpec((1, h), lambda i: (0, 0)),             # wd (VMEM-resident)
                pl.BlockSpec(memory_space=pltpu.MemorySpace.SMEM),  # bd scalar
            ],
            out_specs=pl.BlockSpec((tile, 2), lambda i: (i, 0)),
        ),
        compiler_params=pltpu.CompilerParams(
            dimension_semantics=("parallel",),                      # shard N on v7x's 2 TCs
            vmem_limit_bytes=int(min(vmem_cap // 2, 64 * 2 ** 20)),
        ),
    )(act, wd, bd)


def stand_in_backbone(my_data, edge_index, mask=None, x=None):
    """Deterministic stand-in for the external backbone model (plain-JAX glue).

    Aggregates node features per graph with a masked mean so the head kernel
    receives a [N, h_size] activation, matching the real module's data flow
    (backbone -> Linear(h_size, 2) -> Softmax(dim=1)).
    """
    if mask is None:
        return jnp.mean(my_data, axis=1)
    m = mask[..., None].astype(my_data.dtype)
    return jnp.sum(my_data * m, axis=1) / jnp.maximum(jnp.sum(m, axis=1), 1.0)


def backbone_mlp_forward(my_data, edge_index, w, b, mask=None, x=None):
    act = stand_in_backbone(my_data, edge_index, mask, x)   # [N, h_size]
    return backbone_mlp_head(act, w, b)                     # [N, 2]


if __name__ == "__main__":
    key = jax.random.PRNGKey(0)
    k_data, k_w, k_b, k_mask = jax.random.split(key, 4)

    N = 8          # batch of graphs
    NUM_NODES = 16
    H = 32         # h_size

    my_data = jax.random.normal(k_data, (N, NUM_NODES, H), dtype=jnp.float32)
    edge_index = jnp.zeros((2, 4), dtype=jnp.int32)  # unused by stand-in
    mask = (jax.random.uniform(k_mask, (N, NUM_NODES)) > 0.2).astype(jnp.float32)

    # nn.Linear(h_size, 2) init: U(-1/sqrt(h_size), 1/sqrt(h_size))
    bound = 1.0 / jnp.sqrt(jnp.float32(H))
    w = jax.random.uniform(k_w, (H, 2), minval=-bound, maxval=bound,
                           dtype=jnp.float32)
    b = jax.random.uniform(k_b, (2,), minval=-bound, maxval=bound,
                           dtype=jnp.float32)

    # 1) Full forward (stand-in backbone + Pallas head), single tiny block.
    out = jax.block_until_ready(backbone_mlp_forward(my_data, edge_index, w, b, mask))
    act = stand_in_backbone(my_data, edge_index, mask)
    ref = jax.nn.softmax(act @ w + b, axis=1)
    assert out.shape == (N, 2)
    assert jnp.allclose(out, ref, atol=1e-5, rtol=1e-5)
    assert jnp.allclose(jnp.sum(out, axis=1), 1.0, atol=1e-5)

    # 2) Multi-block grid + ragged partial edge block (no pad, no transpose).
    N2 = 300
    act2 = jax.random.normal(jax.random.PRNGKey(1), (N2, H), dtype=jnp.float32)
    out2 = jax.block_until_ready(backbone_mlp_head(act2, w, b, max_tile_n=128))
    ref2 = jax.nn.softmax(act2 @ w + b, axis=1)
    assert out2.shape == (N2, 2)
    assert jnp.allclose(out2, ref2, atol=1e-5, rtol=1e-5)
    assert jnp.allclose(jnp.sum(out2, axis=1), 1.0, atol=1e-5)

    # 3) bf16 activation path (no wrapper upcast; kernel upcasts in VMEM).
    act3 = act2.astype(jnp.bfloat16)
    out3 = jax.block_until_ready(backbone_mlp_head(act3, w, b))
    ref3 = jax.nn.softmax(act3.astype(jnp.float32) @ w + b, axis=1)
    assert out3.shape == (N2, 2)
    assert jnp.allclose(out3, ref3, atol=1e-5, rtol=1e-5)

    print("KERNEL_OK")
</pallas_src>

<mosaic_0001>
module attributes {stable_mosaic.version = 11 : i64} {
  func.func @head_kernel(%arg0: i32, %arg1: memref<8x32xf32, #tpu.memory_space<vmem>>, %arg2: memref<1x32xf32, #tpu.memory_space<vmem>>, %arg3: memref<1x1xf32, #tpu.memory_space<smem>>, %arg4: memref<8x2xf32, #tpu.memory_space<vmem>>) attributes {dimension_semantics = [#tpu.dimension_semantics<parallel>], iteration_bounds = array<i64: 1>, scalar_prefetch = 0 : i64, scratch_operands = 0 : i64, tpu.core_type = #tpu.core_type<tc>, window_params = [{transform_indices = @transform_0, window_bounds = array<i64: 8, 32>}, {pipeline_mode = #tpu.pipeline_mode<synchronous>, transform_indices = @transform_1, window_bounds = array<i64: 1, 32>}, {transform_indices = @transform_2, window_bounds = array<i64: 1, 1>}, {transform_indices = @transform_3, window_bounds = array<i64: 8, 2>}]} {
    %c0 = arith.constant 0 : index
    %c0_0 = arith.constant 0 : index
    %0 = vector.load %arg1[%c0, %c0_0] : memref<8x32xf32, #tpu.memory_space<vmem>>, vector<8x32xf32>
    %c0_1 = arith.constant 0 : index
    %c0_2 = arith.constant 0 : index
    %1 = vector.load %arg2[%c0_1, %c0_2] : memref<1x32xf32, #tpu.memory_space<vmem>>, vector<1x32xf32>
    %2 = vector.broadcast %1 : vector<1x32xf32> to vector<8x32xf32>
    %3 = arith.mulf %0, %2 : vector<8x32xf32>
    %cst = arith.constant dense<0.000000e+00> : vector<8xf32>
    %4 = vector.multi_reduction <add>, %3, %cst [1] : vector<8x32xf32> to vector<8xf32>
    %5 = vector.shape_cast %4 : vector<8xf32> to vector<8x1xf32>
    %c0_3 = arith.constant 0 : index
    %c0_4 = arith.constant 0 : index
    %6 = memref.load %arg3[%c0_3, %c0_4] : memref<1x1xf32, #tpu.memory_space<smem>>
    %7 = vector.broadcast %6 : f32 to vector<8x1xf32>
    %8 = arith.addf %5, %7 : vector<8x1xf32>
    %cst_5 = arith.constant 0.000000e+00 : f32
    %9 = vector.broadcast %cst_5 : f32 to vector<8x1xf32>
    %10 = arith.subf %9, %8 : vector<8x1xf32>
    %11 = math.exp %10 : vector<8x1xf32>
    %cst_6 = arith.constant 1.000000e+00 : f32
    %12 = vector.broadcast %cst_6 : f32 to vector<8x1xf32>
    %13 = arith.addf %12, %11 : vector<8x1xf32>
    %cst_7 = arith.constant 1.000000e+00 : f32
    %14 = vector.broadcast %cst_7 : f32 to vector<8x1xf32>
    %15 = arith.divf %14, %13 : vector<8x1xf32>
    %16 = tpu.iota {dimensions = array<i32: 1>} : vector<8x2xi32>
    %c0_i32 = arith.constant 0 : i32
    %17 = vector.broadcast %c0_i32 : i32 to vector<8x2xi32>
    %18 = arith.cmpi eq, %16, %17 : vector<8x2xi32>
    %cst_8 = arith.constant 1.000000e+00 : f32
    %19 = vector.broadcast %cst_8 : f32 to vector<8x1xf32>
    %20 = arith.subf %19, %15 : vector<8x1xf32>
    %21 = vector.shape_cast %20 : vector<8x1xf32> to vector<8x1xf32>
    %22 = vector.broadcast %21 : vector<8x1xf32> to vector<8x2xf32>
    %23 = vector.shape_cast %15 : vector<8x1xf32> to vector<8x1xf32>
    %24 = vector.broadcast %23 : vector<8x1xf32> to vector<8x2xf32>
    %25 = arith.select %18, %22, %24 : vector<8x2xi1>, vector<8x2xf32>
    %c0_9 = arith.constant 0 : index
    %c0_10 = arith.constant 0 : index
    %26 = vector.load %arg4[%c0_9, %c0_10] : memref<8x2xf32, #tpu.memory_space<vmem>>, vector<8x2xf32>
    tpu.vector_store %arg4[%c0_9, %c0_10], %25 {strides = array<i32>} : memref<8x2xf32, #tpu.memory_space<vmem>>, vector<8x2xf32>,
    return
  }
  func.func @transform_0(%arg0: i32) -> (i32, i32) {
    %c0_i32 = arith.constant 0 : i32
    %c0_i32_0 = arith.constant 0 : i32
    return %arg0, %c0_i32 : i32, i32
  }
  func.func @transform_1(%arg0: i32) -> (i32, i32) {
    %c0_i32 = arith.constant 0 : i32
    %c0_i32_0 = arith.constant 0 : i32
    %c0_i32_1 = arith.constant 0 : i32
    return %c0_i32, %c0_i32_0 : i32, i32
  }
  func.func @transform_2(%arg0: i32) -> (i32, i32) {
    %c0_i32 = arith.constant 0 : i32
    %c0_i32_0 = arith.constant 0 : i32
    %c0_i32_1 = arith.constant 0 : i32
    return %c0_i32, %c0_i32_0 : i32, i32
  }
  func.func @transform_3(%arg0: i32) -> (i32, i32) {
    %c0_i32 = arith.constant 0 : i32
    %c0_i32_0 = arith.constant 0 : i32
    return %arg0, %c0_i32 : i32, i32
  }
}

</mosaic_0001>

<bundles_post_ra>
// kernel: tpu_custom_call.1
= control target key start
LH: loop header
LB: loop body
LE: loop exit
PB: predicated region body
PF: predicated region fallthrough
CT: control target
= control target key end

     0   :  { %9 = vsyncpa [#allocation4], 0  ;;  %s91_s12 = smov [#allocation3]   ;;  %s133_s0 = inlined_call_operand.hbm [shape: f32[8,32], index: 0, kind: input, shape index: {}]   ;;  %s134_s1 = inlined_call_operand.vmem [shape: f32[1,32], index: 1, kind: input, shape index: {}]   ;;  %s135_s2 = inlined_call_operand.<no memory space> [shape: f32[1,1], index: 2, kind: input, shape index: {}]   ;;  %s136_s3 = inlined_call_operand.vmem [shape: f32[8,2], index: 3, kind: output, shape index: {}]  }
   0x1   :  { %s16_s13 = sshll.u32 %s91_s12, 4  ;;  %s67_s16 = scalar_lea.hbm %s133_s0, 128  ;;  %s17_s13 = int_to_ptr.vmem [resolvable:$true] %s16_s13 }
   0x2   :  { %p68_p0 = scmp.ne.s32.totalorder %s133_s0, %s67_s16  ;;  %p71_p1 = scmp.lt.u32.totalorder %s67_s16, %s133_s0 }
   0x4   :  { %p73_p2 = pnand %p71_p1, %p68_p0 }
   0x6   :  { %76 = shalt.err (!%p73_p2)
}
   0x7   :  { %s77_s21 = scalar_lea.vmem %s17_s13, 128  ;;  %p82_p4 = scmp.lt.s32.totalorder %s17_s13, %s17_s13 }
   0x8   :  { %p78_p3 = scmp.ne.s32.totalorder %s17_s13, %s77_s21  ;;  %p83_p5 = scmp.lt.s32.totalorder %s77_s21, %s77_s21 }
   0xa   :  { %p84_p6 = por %p83_p5, %p82_p4 }
   0xc   :  { %p85_p7 = pnand %p84_p6, %p78_p3 }
   0xe   :  { %88 = shalt.err (!%p85_p7)
}
   0xf   :  { %19 = dma.hbm_to_vmem [thread:$0]  %s133_s0, 128, %s17_s13, [#allocation4]  }
  0x10   :  { %89 = dma.done.wait [#allocation4], 128  }
  0x11   :  { %90 = vsyncadd [#allocation4], 4294967168  ;;  %v27_v0 = vld [vmem:[#allocation3] sm:$0xff]  ;;  %vm36_vm0 = vcmask 261120   ;;  %v41_v4 = vstv %s135_s2  ;;  %v49_v11 = vlaneseq  ;;  %vm54_vm2 = vcmask 15360  }
  0x12   :  { %v61_v1 = vld [vmem:[%s134_s1] ss:$0 sm:$0xff] }
  0x13   :  { %v35_v2 = vmul.f32 %v61_v1, %v27_v0  ;;  %v50_v12 = vand.u32 127, %v49_v11 }
  0x15   :  { %v37_v3 = vsel %vm36_vm0, %v35_v2, 0.0  ;;  %vm51_vm1 = vcmp.eq.s32.totalorder %v50_v12, 0 }
  0x16   :  { %38 = vadd.xlane.f32.xlu0 %v37_v3 }
  0xa3   :  { %v39_v5 = vpop.xlane.xlu0 %38 }
  0xa4   :  { %v42_v6 = vadd.f32 %v41_v4, %v39_v5 }
  0xa6   :  { %v43_v7 = vsub.f32 0.0, %v42_v6 }
  0xa8   :  { %v44_v8 = vmul.f32 1.442695, %v43_v7 }
  0xaa   :  { %63 = vpow2.f32 %v44_v8 }
  0xb4   :  { %v64_v9 = vpop.eup %63 }
  0xb5   :  { %v46_v10 = vadd.f32 1.0, %v64_v9 }
  0xb7   :  { %65 = vrcp.f32 %v46_v10 }
  0xc1   :  { %v66_v13 = vpop.eup %65 }
  0xc2   :  { %v52_v14 = vsub.f32 1.0, %v66_v13 }
  0xc4   :  { %v53_v15 = vsel %vm51_vm1, %v52_v14, %v66_v13 }
  0xc5   :  { %55 = vst.msk [vmem:[%s136_s3] sm:$0xff] %vm54_vm2, %v53_v15 }
  0xc6   :  { %60 = vsyncpa [#allocation4], 1 }

</bundles_post_ra>
